<compile_context>
chip_gen: v7x
topology: tpu7x:2x2x1
jax: 0.10.0
libtpu: 0.0.40
codegen_flags: <defaults>
</compile_context>

<pallas_src>
import functools

import jax
import jax.numpy as jnp
from jax.experimental import pallas as pl
from jax.experimental.pallas import tpu as pltpu

IN_FEATURES = 231          # 3 * 7 * 11 per sample after flatten
HIDDEN = 64
N_ACTIONS = 4
ACT_PAD = 128              # 4 logits padded to a full vreg lane width
MAX_TILE_ROWS = 4096       # batch rows per grid step (multiple of 8)
NUM_SPLITS = 2             # leading "parallel" grid axis (both TCs on v7x)


def _round_up(n, m):
    return (n + m - 1) // m * m


def _net_kernel(x_ref, w1_ref, b1_ref, w2_ref, b2_ref, w3_ref, b3_ref,
                pmax_ref, pidx_ref, m_sc, i_sc,
                *, batch, tile_rows, tiles_per_split):
    """One batch tile of the fused MLP forward + carried per-split argmax.

    x_ref:  (TB, 231) f32     w1_ref: (231, 64) bf16   b1_ref: (1, 64)  f32
    w2_ref: (64, 64)  bf16    b2_ref: (1, 64)  f32
    w3_ref: (64, 128) bf16    b3_ref: (1, 128) f32 (-inf on padded cols)
    pmax_ref / pidx_ref: (1, 128) per-split partial max / flat index blocks
    m_sc / i_sc: (1,) f32 / i32 SMEM scalars carrying the running best.
    """
    c = pl.program_id(0)          # parallel split (TensorCore on v7x)
    t = pl.program_id(1)          # carried ("arbitrary") batch-tile axis

    @pl.when(t == 0)
    def _init():
        m_sc[0] = jnp.float32(-jnp.inf)
        i_sc[0] = jnp.int32(0)

    # ---- fused MLP (bf16 operands, f32 accumulation on the MXU) ----
    xb = x_ref[...].astype(jnp.bfloat16)                               # (TB, 231)
    h1 = jnp.tanh(
        jnp.dot(xb, w1_ref[...], preferred_element_type=jnp.float32)
        + b1_ref[...])
    h2 = jnp.tanh(
        jnp.dot(h1.astype(jnp.bfloat16), w2_ref[...],
                preferred_element_type=jnp.float32) + b2_ref[...])
    logits = (
        jnp.dot(h2.astype(jnp.bfloat16), w3_ref[...],
                preferred_element_type=jnp.float32) + b3_ref[...])     # (TB,128)

    # ---- lane-dense argmax over this tile ----
    gtile = c * tiles_per_split + t            # unclamped global tile number
    base = gtile * tile_rows
    local_row = jax.lax.broadcasted_iota(jnp.int32, (tile_rows, 1), 0)
    row_id = base + local_row                                           # (TB, 1)
    # mask ragged / out-of-range / duplicate rows (kills any garbage values);
    # padded logit columns were already killed by the -inf bias.
    masked = jnp.where(row_id < batch, logits, -jnp.inf)               # (TB,128)
    tile_max = jnp.max(masked)                                         # scalar

    col = jax.lax.broadcasted_iota(jnp.int32, (tile_rows, ACT_PAD), 1)
    flat = row_id * N_ACTIONS + col                                    # (TB,128)
    big = jnp.int32(jnp.iinfo(jnp.int32).max)
    tile_idx = jnp.min(jnp.where(masked == tile_max, flat, big))       # scalar

    # ---- fold into the running best (scalar SMEM ops); strict '>' keeps the
    # earliest tile, min flat index keeps the earliest row/col -> torch
    # first-occurrence tie-breaking ----
    better = tile_max > m_sc[0]
    i_sc[0] = jnp.where(better, tile_idx, i_sc[0])
    m_sc[0] = jnp.where(better, tile_max, m_sc[0])

    @pl.when(t == pl.num_programs(1) - 1)
    def _finalize():
        pmax_ref[...] = jnp.full((1, ACT_PAD), m_sc[0], jnp.float32)
        pidx_ref[...] = jnp.full((1, ACT_PAD), i_sc[0], jnp.int32)


def init_params(key):
    """Deterministic nn.Linear-style init: U(-1/sqrt(fan_in), +1/sqrt(fan_in))."""
    def linear(key, fan_in, fan_out):
        kw, kb = jax.random.split(key)
        bound = 1.0 / jnp.sqrt(jnp.float32(fan_in))
        # stored as (in, out): already transposed w.r.t. torch's (out, in)
        w = jax.random.uniform(kw, (fan_in, fan_out), jnp.float32, -bound, bound)
        b = jax.random.uniform(kb, (1, fan_out), jnp.float32, -bound, bound)
        return w, b

    k1, k2, k3 = jax.random.split(key, 3)
    w1, b1 = linear(k1, IN_FEATURES, HIDDEN)
    w2, b2 = linear(k2, HIDDEN, HIDDEN)
    w3, b3 = linear(k3, HIDDEN, N_ACTIONS)
    return (w1, b1, w2, b2, w3, b3)


@functools.partial(jax.jit, static_argnames=("tile_rows",))
def net_forward(x, params, tile_rows=None):
    """x: any shape (B, ...) whose trailing dims flatten to 231 features."""
    w1, b1, w2, b2, w3, b3 = params
    batch = x.shape[0]
    # reshape of a contiguous f32 array: metadata only, no extra HBM pass
    x_flat = x.reshape(batch, -1).astype(jnp.float32)
    assert x_flat.shape[1] == IN_FEATURES, x_flat.shape

    # tiny, VMEM-resident weights: bf16 matmul operands, lane-padded logits
    w1b = w1.astype(jnp.bfloat16)
    w2b = w2.astype(jnp.bfloat16)
    w3b = jnp.pad(w3, ((0, 0), (0, ACT_PAD - N_ACTIONS))).astype(jnp.bfloat16)
    b3p = jnp.pad(b3, ((0, 0), (0, ACT_PAD - N_ACTIONS)),
                  constant_values=-jnp.inf)     # padded logits can never win

    if tile_rows is None:
        tile_rows = min(MAX_TILE_ROWS, _round_up(batch, 8))
    assert tile_rows % 8 == 0, tile_rows

    num_tiles = pl.cdiv(batch, tile_rows)           # ragged last tile is masked
    tiles_per_split = pl.cdiv(num_tiles, NUM_SPLITS)
    last_tile = num_tiles - 1

    def x_index_map(c, t):
        # clamp so idle duplicate steps re-read the last real tile (their rows
        # are all >= batch and get masked out in-kernel)
        return (jnp.minimum(c * tiles_per_split + t, last_tile), 0)

    kernel = functools.partial(_net_kernel, batch=batch, tile_rows=tile_rows,
                               tiles_per_split=tiles_per_split)

    flops = 2 * batch * (IN_FEATURES * HIDDEN + HIDDEN * HIDDEN + HIDDEN * ACT_PAD)
    bytes_accessed = (x_flat.size * 4 + w1b.size * 2 + w2b.size * 2
                      + w3b.size * 2 + (b1.size + b2.size + b3p.size) * 4
                      + 2 * NUM_SPLITS * ACT_PAD * 4)

    pmax, pidx = pl.pallas_call(
        kernel,
        out_shape=(jax.ShapeDtypeStruct((1, NUM_SPLITS * ACT_PAD), jnp.float32),
                   jax.ShapeDtypeStruct((1, NUM_SPLITS * ACT_PAD), jnp.int32)),
        grid=(NUM_SPLITS, tiles_per_split),
        in_specs=[
            pl.BlockSpec((tile_rows, IN_FEATURES), x_index_map),     # streamed x
            pl.BlockSpec((IN_FEATURES, HIDDEN), lambda c, t: (0, 0)),  # w1
            pl.BlockSpec((1, HIDDEN), lambda c, t: (0, 0)),            # b1
            pl.BlockSpec((HIDDEN, HIDDEN), lambda c, t: (0, 0)),       # w2
            pl.BlockSpec((1, HIDDEN), lambda c, t: (0, 0)),            # b2
            pl.BlockSpec((HIDDEN, ACT_PAD), lambda c, t: (0, 0)),      # w3
            pl.BlockSpec((1, ACT_PAD), lambda c, t: (0, 0)),           # b3
        ],
        out_specs=(pl.BlockSpec((1, ACT_PAD), lambda c, t: (0, c)),
                   pl.BlockSpec((1, ACT_PAD), lambda c, t: (0, c))),
        scratch_shapes=[pltpu.SMEM((1,), jnp.float32),   # running max
                        pltpu.SMEM((1,), jnp.int32)],    # running flat idx
        compiler_params=pltpu.CompilerParams(
            dimension_semantics=("parallel", "arbitrary"),
            vmem_limit_bytes=48 * 1024 * 1024),
        cost_estimate=pl.CostEstimate(
            flops=flops,
            transcendentals=batch * 2 * HIDDEN,
            bytes_accessed=bytes_accessed),
    )(x_flat, w1b, b1, w2b, b2, w3b, b3p)

    # merge the per-split partials: argmax ties break toward split 0, which
    # owns the lower flat indices -> torch first-occurrence semantics.
    vals = pmax.reshape(NUM_SPLITS, ACT_PAD)[:, 0]
    ids = pidx.reshape(NUM_SPLITS, ACT_PAD)[:, 0]
    best = jnp.argmax(vals)
    # torch returns an int64 scalar; we return int32 (JAX default, no x64).
    return ids[best].astype(jnp.int32)


def _reference_logits(x, params):
    """Pure-JAX reference with the same bf16-operand / f32-accum math."""
    w1, b1, w2, b2, w3, b3 = params
    xf = x.reshape(x.shape[0], -1).astype(jnp.float32)
    h = jnp.tanh(jnp.dot(xf.astype(jnp.bfloat16), w1.astype(jnp.bfloat16),
                         preferred_element_type=jnp.float32) + b1)
    h = jnp.tanh(jnp.dot(h.astype(jnp.bfloat16), w2.astype(jnp.bfloat16),
                         preferred_element_type=jnp.float32) + b2)
    return jnp.dot(h.astype(jnp.bfloat16), w3.astype(jnp.bfloat16),
                   preferred_element_type=jnp.float32) + b3


def _check(out_idx, x, params):
    logits = jax.block_until_ready(_reference_logits(x, params)).reshape(-1)
    ref_idx = int(jnp.argmax(logits))
    out_idx = int(out_idx)
    if out_idx != ref_idx:
        # Tolerate ulp-level ties between MXU/EUP kernel math and XLA math;
        # any real indexing bug would pick a logit far from the maximum.
        assert float(logits[out_idx]) >= float(logits[ref_idx]) - 1e-4, \
            (out_idx, ref_idx, float(logits[out_idx]), float(logits[ref_idx]))


if __name__ == "__main__":
    key = jax.random.PRNGKey(0)
    k_params, k_x1, k_x2 = jax.random.split(key, 3)

    params = init_params(k_params)

    # Small example observation: batch=2, (3, 7, 11) flattens to 231 features.
    # Exercises the ragged (partially out-of-range) tile + idle-split paths.
    x_small = jax.random.normal(k_x1, (2, 3, 7, 11), jnp.float32)
    out_small = jax.block_until_ready(net_forward(x_small, params))
    _check(out_small, x_small, params)

    # Multi-tile grid + carried running-argmax + 2-way split merge
    # (batch=20, forced tile of 8 rows -> 3 real tiles across 2 splits).
    x_multi = jax.random.normal(k_x2, (20, 3, 7, 11), jnp.float32)
    out_multi = jax.block_until_ready(net_forward(x_multi, params, tile_rows=8))
    _check(out_multi, x_multi, params)

    print("KERNEL_OK")
</pallas_src>

<mosaic_0001>
module attributes {stable_mosaic.version = 11 : i64} {
  func.func @_net_kernel(%arg0: i32, %arg1: i32, %arg2: memref<8x231xf32, #tpu.memory_space<vmem>>, %arg3: memref<231x64xbf16, #tpu.memory_space<vmem>>, %arg4: memref<1x64xf32, #tpu.memory_space<vmem>>, %arg5: memref<64x64xbf16, #tpu.memory_space<vmem>>, %arg6: memref<1x64xf32, #tpu.memory_space<vmem>>, %arg7: memref<64x128xbf16, #tpu.memory_space<vmem>>, %arg8: memref<1x128xf32, #tpu.memory_space<vmem>>, %arg9: memref<1x128xf32, #tpu.memory_space<vmem>>, %arg10: memref<1x128xi32, #tpu.memory_space<vmem>>, %arg11: memref<1xf32, #tpu.memory_space<smem>>, %arg12: memref<1xi32, #tpu.memory_space<smem>>) attributes {dimension_semantics = [#tpu.dimension_semantics<parallel>, #tpu.dimension_semantics<arbitrary>], iteration_bounds = array<i64: 2, 1>, scalar_prefetch = 0 : i64, scratch_operands = 2 : i64, tpu.core_type = #tpu.core_type<tc>, window_params = [{transform_indices = @transform_0, window_bounds = array<i64: 8, 231>}, {pipeline_mode = #tpu.pipeline_mode<synchronous>, transform_indices = @transform_1, window_bounds = array<i64: 231, 64>}, {pipeline_mode = #tpu.pipeline_mode<synchronous>, transform_indices = @transform_2, window_bounds = array<i64: 1, 64>}, {pipeline_mode = #tpu.pipeline_mode<synchronous>, transform_indices = @transform_3, window_bounds = array<i64: 64, 64>}, {pipeline_mode = #tpu.pipeline_mode<synchronous>, transform_indices = @transform_4, window_bounds = array<i64: 1, 64>}, {pipeline_mode = #tpu.pipeline_mode<synchronous>, transform_indices = @transform_5, window_bounds = array<i64: 64, 128>}, {pipeline_mode = #tpu.pipeline_mode<synchronous>, transform_indices = @transform_6, window_bounds = array<i64: 1, 128>}, {transform_indices = @transform_7, window_bounds = array<i64: 1, 128>}, {transform_indices = @transform_8, window_bounds = array<i64: 1, 128>}]} {
    %c0_i32 = arith.constant 0 : i32
    %0 = arith.cmpi eq, %arg1, %c0_i32 : i32
    %1 = arith.extui %0 : i1 to i32
    %c0_i32_0 = arith.constant 0 : i32
    %2 = arith.cmpi ne, %1, %c0_i32_0 : i32
    scf.if %2 {
      %cst_26 = arith.constant 0xFF800000 : f32
      %c0_27 = arith.constant 0 : index
      %64 = memref.load %arg11[%c0_27] : memref<1xf32, #tpu.memory_space<smem>>
      memref.store %cst_26, %arg11[%c0_27] : memref<1xf32, #tpu.memory_space<smem>>
      %c0_i32_28 = arith.constant 0 : i32
      %c0_29 = arith.constant 0 : index
      %65 = memref.load %arg12[%c0_29] : memref<1xi32, #tpu.memory_space<smem>>
      memref.store %c0_i32_28, %arg12[%c0_29] : memref<1xi32, #tpu.memory_space<smem>>
    } else {
    }
    %c0 = arith.constant 0 : index
    %c0_1 = arith.constant 0 : index
    %3 = vector.load %arg2[%c0, %c0_1] : memref<8x231xf32, #tpu.memory_space<vmem>>, vector<8x231xf32>
    %4 = arith.truncf %3 : vector<8x231xf32> to vector<8x231xbf16>
    %c0_2 = arith.constant 0 : index
    %c0_3 = arith.constant 0 : index
    %5 = vector.load %arg3[%c0_2, %c0_3] : memref<231x64xbf16, #tpu.memory_space<vmem>>, vector<231x64xbf16>
    %cst = arith.constant dense<0.000000e+00> : vector<8x64xf32>
    %6 = tpu.matmul %4, %5, %cst {dimension_numbers = #tpu.dot_dimension_numbers<[1], [0], [0], [1], [0, 0, 1, 1], [], []>} : vector<8x231xbf16>, vector<231x64xbf16>, vector<8x64xf32> -> vector<8x64xf32>
    %c0_4 = arith.constant 0 : index
    %c0_5 = arith.constant 0 : index
    %7 = vector.load %arg4[%c0_4, %c0_5] : memref<1x64xf32, #tpu.memory_space<vmem>>, vector<1x64xf32>
    %8 = vector.broadcast %7 : vector<1x64xf32> to vector<8x64xf32>
    %9 = arith.addf %6, %8 : vector<8x64xf32>
    %10 = math.tanh %9 : vector<8x64xf32>
    %11 = arith.truncf %10 : vector<8x64xf32> to vector<8x64xbf16>
    %c0_6 = arith.constant 0 : index
    %c0_7 = arith.constant 0 : index
    %12 = vector.load %arg5[%c0_6, %c0_7] : memref<64x64xbf16, #tpu.memory_space<vmem>>, vector<64x64xbf16>
    %cst_8 = arith.constant dense<0.000000e+00> : vector<8x64xf32>
    %13 = tpu.matmul %11, %12, %cst_8 {dimension_numbers = #tpu.dot_dimension_numbers<[1], [0], [0], [1], [0, 0, 1, 1], [], []>} : vector<8x64xbf16>, vector<64x64xbf16>, vector<8x64xf32> -> vector<8x64xf32>
    %c0_9 = arith.constant 0 : index
    %c0_10 = arith.constant 0 : index
    %14 = vector.load %arg6[%c0_9, %c0_10] : memref<1x64xf32, #tpu.memory_space<vmem>>, vector<1x64xf32>
    %15 = vector.broadcast %14 : vector<1x64xf32> to vector<8x64xf32>
    %16 = arith.addf %13, %15 : vector<8x64xf32>
    %17 = math.tanh %16 : vector<8x64xf32>
    %18 = arith.truncf %17 : vector<8x64xf32> to vector<8x64xbf16>
    %c0_11 = arith.constant 0 : index
    %c0_12 = arith.constant 0 : index
    %19 = vector.load %arg7[%c0_11, %c0_12] : memref<64x128xbf16, #tpu.memory_space<vmem>>, vector<64x128xbf16>
    %cst_13 = arith.constant dense<0.000000e+00> : vector<8x128xf32>
    %20 = tpu.matmul %18, %19, %cst_13 {dimension_numbers = #tpu.dot_dimension_numbers<[1], [0], [0], [1], [0, 0, 1, 1], [], []>} : vector<8x64xbf16>, vector<64x128xbf16>, vector<8x128xf32> -> vector<8x128xf32>
    %c0_14 = arith.constant 0 : index
    %c0_15 = arith.constant 0 : index
    %21 = vector.load %arg8[%c0_14, %c0_15] : memref<1x128xf32, #tpu.memory_space<vmem>>, vector<1x128xf32>
    %22 = vector.broadcast %21 : vector<1x128xf32> to vector<8x128xf32>
    %23 = arith.addf %20, %22 : vector<8x128xf32>
    %c1_i32 = arith.constant 1 : i32
    %24 = arith.muli %arg0, %c1_i32 : i32
    %25 = arith.addi %24, %arg1 : i32
    %c8_i32 = arith.constant 8 : i32
    %26 = arith.muli %25, %c8_i32 : i32
    %27 = tpu.iota {dimensions = array<i32: 0>} : vector<8x1xi32>
    %28 = vector.broadcast %26 : i32 to vector<8x1xi32>
    %29 = arith.addi %28, %27 : vector<8x1xi32>
    %c2_i32 = arith.constant 2 : i32
    %30 = vector.broadcast %c2_i32 : i32 to vector<8x1xi32>
    %31 = arith.cmpi slt, %29, %30 : vector<8x1xi32>
    %cst_16 = arith.constant 0xFF800000 : f32
    %32 = vector.shape_cast %31 : vector<8x1xi1> to vector<8x1xi1>
    %33 = vector.broadcast %32 : vector<8x1xi1> to vector<8x128xi1>
    %34 = vector.broadcast %cst_16 : f32 to vector<8x128xf32>
    %35 = arith.select %33, %23, %34 : vector<8x128xi1>, vector<8x128xf32>
    %36 = vector.shape_cast %35 : vector<8x128xf32> to vector<1x8x128xf32>
    %cst_17 = arith.constant dense<0xFF800000> : vector<1xf32>
    %37 = vector.multi_reduction <maximumf>, %36, %cst_17 [1, 2] : vector<1x8x128xf32> to vector<1xf32>
    %38 = vector.shape_cast %37 : vector<1xf32> to vector<1x1x1xf32>
    %39 = vector.extract %38[0, 0, 0] : f32 from vector<1x1x1xf32>
    %40 = tpu.iota {dimensions = array<i32: 1>} : vector<8x128xi32>
    %c4_i32 = arith.constant 4 : i32
    %41 = vector.broadcast %c4_i32 : i32 to vector<8x1xi32>
    %42 = arith.muli %29, %41 : vector<8x1xi32>
    %43 = vector.broadcast %42 : vector<8x1xi32> to vector<8x128xi32>
    %44 = arith.addi %43, %40 : vector<8x128xi32>
    %45 = vector.broadcast %39 : f32 to vector<8x128xf32>
    %46 = arith.cmpf oeq, %35, %45 : vector<8x128xf32>
    %c2147483647_i32 = arith.constant 2147483647 : i32
    %47 = vector.broadcast %c2147483647_i32 : i32 to vector<8x128xi32>
    %48 = arith.select %46, %44, %47 : vector<8x128xi1>, vector<8x128xi32>
    %49 = vector.shape_cast %48 : vector<8x128xi32> to vector<1x8x128xi32>
    %cst_18 = arith.constant dense<2147483647> : vector<1xi32>
    %50 = vector.multi_reduction <minsi>, %49, %cst_18 [1, 2] : vector<1x8x128xi32> to vector<1xi32>
    %51 = vector.shape_cast %50 : vector<1xi32> to vector<1x1x1xi32>
    %52 = vector.extract %51[0, 0, 0] : i32 from vector<1x1x1xi32>
    %c0_19 = arith.constant 0 : index
    %53 = memref.load %arg11[%c0_19] : memref<1xf32, #tpu.memory_space<smem>>
    %54 = arith.cmpf ogt, %39, %53 : f32
    %c0_20 = arith.constant 0 : index
    %55 = memref.load %arg12[%c0_20] : memref<1xi32, #tpu.memory_space<smem>>
    %56 = arith.select %54, %52, %55 : i32
    %c0_21 = arith.constant 0 : index
    %57 = memref.load %arg12[%c0_21] : memref<1xi32, #tpu.memory_space<smem>>
    memref.store %56, %arg12[%c0_21] : memref<1xi32, #tpu.memory_space<smem>>
    %c0_22 = arith.constant 0 : index
    %58 = memref.load %arg11[%c0_22] : memref<1xf32, #tpu.memory_space<smem>>
    %59 = arith.select %54, %39, %58 : f32
    %c0_23 = arith.constant 0 : index
    %60 = memref.load %arg11[%c0_23] : memref<1xf32, #tpu.memory_space<smem>>
    memref.store %59, %arg11[%c0_23] : memref<1xf32, #tpu.memory_space<smem>>
    %c0_i32_24 = arith.constant 0 : i32
    %61 = arith.cmpi eq, %arg1, %c0_i32_24 : i32
    %62 = arith.extui %61 : i1 to i32
    %c0_i32_25 = arith.constant 0 : i32
    %63 = arith.cmpi ne, %62, %c0_i32_25 : i32
    scf.if %63 {
      %c0_26 = arith.constant 0 : index
      %64 = memref.load %arg11[%c0_26] : memref<1xf32, #tpu.memory_space<smem>>
      %65 = vector.broadcast %64 : f32 to vector<1x128xf32>
      %c0_27 = arith.constant 0 : index
      %c0_28 = arith.constant 0 : index
      %66 = vector.load %arg9[%c0_27, %c0_28] : memref<1x128xf32, #tpu.memory_space<vmem>>, vector<1x128xf32>
      tpu.vector_store %arg9[%c0_27, %c0_28], %65 {strides = array<i32>} : memref<1x128xf32, #tpu.memory_space<vmem>>, vector<1x128xf32>,
      %c0_29 = arith.constant 0 : index
      %67 = memref.load %arg12[%c0_29] : memref<1xi32, #tpu.memory_space<smem>>
      %68 = vector.broadcast %67 : i32 to vector<1x128xi32>
      %c0_30 = arith.constant 0 : index
      %c0_31 = arith.constant 0 : index
      %69 = vector.load %arg10[%c0_30, %c0_31] : memref<1x128xi32, #tpu.memory_space<vmem>>, vector<1x128xi32>
      tpu.vector_store %arg10[%c0_30, %c0_31], %68 {strides = array<i32>} : memref<1x128xi32, #tpu.memory_space<vmem>>, vector<1x128xi32>,
    } else {
    }
    return
  }
  func.func @transform_0(%arg0: i32, %arg1: i32) -> (i32, i32) {
    %c1_i32 = arith.constant 1 : i32
    %0 = arith.muli %arg0, %c1_i32 : i32
    %1 = arith.addi %0, %arg1 : i32
    %c0_i32 = arith.constant 0 : i32
    %2 = arith.minsi %1, %c0_i32 : i32
    %c0_i32_0 = arith.constant 0 : i32
    %c0_i32_1 = arith.constant 0 : i32
    return %2, %c0_i32_0 : i32, i32
  }
  func.func @transform_1(%arg0: i32, %arg1: i32) -> (i32, i32) {
    %c0_i32 = arith.constant 0 : i32
    %c0_i32_0 = arith.constant 0 : i32
    %c0_i32_1 = arith.constant 0 : i32
    return %c0_i32, %c0_i32_0 : i32, i32
  }
  func.func @transform_2(%arg0: i32, %arg1: i32) -> (i32, i32) {
    %c0_i32 = arith.constant 0 : i32
    %c0_i32_0 = arith.constant 0 : i32
    %c0_i32_1 = arith.constant 0 : i32
    return %c0_i32, %c0_i32_0 : i32, i32
  }
  func.func @transform_3(%arg0: i32, %arg1: i32) -> (i32, i32) {
    %c0_i32 = arith.constant 0 : i32
    %c0_i32_0 = arith.constant 0 : i32
    %c0_i32_1 = arith.constant 0 : i32
    return %c0_i32, %c0_i32_0 : i32, i32
  }
  func.func @transform_4(%arg0: i32, %arg1: i32) -> (i32, i32) {
    %c0_i32 = arith.constant 0 : i32
    %c0_i32_0 = arith.constant 0 : i32
    %c0_i32_1 = arith.constant 0 : i32
    return %c0_i32, %c0_i32_0 : i32, i32
  }
  func.func @transform_5(%arg0: i32, %arg1: i32) -> (i32, i32) {
    %c0_i32 = arith.constant 0 : i32
    %c0_i32_0 = arith.constant 0 : i32
    %c0_i32_1 = arith.constant 0 : i32
    return %c0_i32, %c0_i32_0 : i32, i32
  }
  func.func @transform_6(%arg0: i32, %arg1: i32) -> (i32, i32) {
    %c0_i32 = arith.constant 0 : i32
    %c0_i32_0 = arith.constant 0 : i32
    %c0_i32_1 = arith.constant 0 : i32
    return %c0_i32, %c0_i32_0 : i32, i32
  }
  func.func @transform_7(%arg0: i32, %arg1: i32) -> (i32, i32) {
    %c0_i32 = arith.constant 0 : i32
    %c0_i32_0 = arith.constant 0 : i32
    return %c0_i32, %arg0 : i32, i32
  }
  func.func @transform_8(%arg0: i32, %arg1: i32) -> (i32, i32) {
    %c0_i32 = arith.constant 0 : i32
    %c0_i32_0 = arith.constant 0 : i32
    return %c0_i32, %arg0 : i32, i32
  }
}

</mosaic_0001>

<bundles_post_ra>
// kernel: net_forward.1
= control target key start
LH: loop header
LB: loop body
LE: loop exit
PB: predicated region body
PF: predicated region fallthrough
CT: control target
= control target key end

     0   :  { %s1107_s27 = smov 0   ;;  %s1109_s28 = smov 0   ;;  %s1263_s0 = inlined_call_operand.vmem [shape: f32[2,231], index: 0, kind: input, shape index: {}]   ;;  %s1264_s1 = inlined_call_operand.vmem [shape: bf16[231,64], index: 1, kind: input, shape index: {}]   ;;  %s1265_s2 = inlined_call_operand.vmem [shape: f32[1,64], index: 2, kind: input, shape index: {}]   ;;  %s1266_s3 = inlined_call_operand.vmem [shape: bf16[64,64], index: 3, kind: input, shape index: {}]   ;;  %s1267_s4 = inlined_call_operand.vmem [shape: f32[1,64], index: 4, kind: input, shape index: {}]   ;;  %s1268_s5 = inlined_call_operand.vmem [shape: bf16[64,128], index: 5, kind: input, shape index: {}]   ;;  %s1269_s6 = inlined_call_operand.vmem [shape: f32[1,128], index: 6, kind: input, shape index: {}]   ;;  %s1270_s7 = inlined_call_operand.vmem [shape: f32[1,256], index: 7, kind: output, shape index: {0}]   ;;  %s1271_s8 = inlined_call_operand.vmem [shape: s32[1,256], index: 8, kind: output, shape index: {1}]  }
   0x1   :  { %s1111_s29 = smov 0  }
   0x2 LB: > { %s31_s30 = sadd.s32 1, %s1052_s28  ;;  %p899_p0 = scmp.ge.s32.totalorder %s1056_s29, 1  ;;  %s1056_s29 = sphi %s1111_s29, %s19_s29   ;;  %s1052_s28 = sphi %s1109_s28, %s1273_s28   ;;  %s1048_s27 = sphi %s1107_s27, %s1272_s27  }
   0x3   : > { %p33_p1 = scmp.ge.s32.totalorder %s31_s30, 2  ;;  %p297_p2 = scmp.lt.s32.totalorder %s1056_s29, 3 }
   0x5   : > { %s1275_s30 = smov (%p33_p1, %s31_s30), 0  ;;  %p298_p3 = pnand %p899_p0, %p297_p2 }
   0x6   : > { %v1003_v0 = vld [vmem:[%s1264_s1] sm:$0xff] (!%p298_p3)   ;;  %v1058_v1 = vmov (!%p298_p3), 0   ;;  %v1004_v2 = vld [vmem:[%s1264_s1 + $0x8] sm:$0xff] (!%p298_p3)   ;;  %v1005_v3 = vld [vmem:[%s1264_s1 + $0x10] sm:$0xff] (!%p298_p3)   ;;  %p340_p4 = scmp.lt.s32.totalorder (!%p298_p3), %s1048_s27, 0  ;;  %v386_v5 = vlaneseq (!%p298_p3)  ;;  %vm526_vm0 = vcmask (!%p298_p3), 842752  }
   0x7   : > { %301 = sbr.rel (%p298_p3) target bundleno = 1302 (0x516), region = 48  ;;  %537 = vmatprep.subr.bf16.mxu0 (!%p298_p3), %v1058_v1  ;;  %v1006_v4 = vld [vmem:[%s1264_s1 + $0x18] sm:$0xff] (!%p298_p3)   ;;  %v1007_v6 = vld [vmem:[%s1264_s1 + $0x20] sm:$0xff] (!%p298_p3)   ;;  %v1008_v8 = vld [vmem:[%s1264_s1 + $0x28] sm:$0xff] (!%p298_p3)   ;;  %vm530_vm1 = vcmask (!%p298_p3), 1042432   ;;  %vm531_vm2 = vcmask (!%p298_p3), 1043456  }
   0x8   : > { %538 = vmatpush1.bf16.msra.mxu0 (!%p298_p3), %v1003_v0  ;;  %v1150_v7 = vshrl.u32 (!%p298_p3), %v386_v5, 7  ;;  %v1009_v11 = vld [vmem:[%s1264_s1 + $0x30] sm:$0xff] (!%p298_p3)   ;;  %v1010_v14 = vld [vmem:[%s1264_s1 + $0x38] sm:$0xff] (!%p298_p3)   ;;  %v1011_v15 = vld [vmem:[%s1264_s1 + $0x40] sm:$0xff] (!%p298_p3)   ;;  %v1059_v20 = vmov (!%p298_p3), 65535   ;;  %v1060_v29 = vmov (!%p298_p3), 0.0  }
   0x9   : > { %539 = vmatprep.subr.bf16.mxu0 (!%p298_p3), %v1058_v1  ;;  %v1012_v16 = vld [vmem:[%s1264_s1 + $0x48] sm:$0xff] (!%p298_p3)   ;;  %v1013_v17 = vld [vmem:[%s1264_s1 + $0x50] sm:$0xff] (!%p298_p3)   ;;  %v1014_v18 = vld [vmem:[%s1264_s1 + $0x58] sm:$0xff] (!%p298_p3)   ;;  %v532_v21 = vsel (!%p298_p3), %vm530_vm1, 4294967295, %v1059_v20  ;;  %946 = vmatprep.subr.bf16.mxu1 (!%p298_p3), %v1060_v29  ;;  %vm1061_vm3 = vmmov (!%p298_p3), 0   ;;  %vm618_vm4 = vcmask (!%p298_p3), 523264  }
   0xa   : > { %v1015_v19 = vld [vmem:[%s1264_s1 + $0x60] sm:$0xff] (!%p298_p3)   ;;  %v1016_v22 = vld [vmem:[%s1264_s1 + $0x68] sm:$0xff] (!%p298_p3)   ;;  %v1017_v23 = vld [vmem:[%s1264_s1 + $0x70] ss:$0 sps:$4 sm:$0xff] (!%p298_p3)   ;;  %v533_v24 = vsel (!%p298_p3), %vm531_vm2, %v532_v21, 0  ;;  %954 = vmatprep.mubr.msk.bf16.mxu1 (!%p298_p3), %vm1061_vm3, %v1060_v29  ;;  %s932_s11 = sshll.u32 (!%p298_p3), %s1048_s27, 3 }
   0xb   : > { %v535_v26 = vand.u32 (!%p298_p3), %v1017_v23, %v533_v24  ;;  %v1020_v28 = vld [vmem:[%s1266_s3] sm:$0xff] (!%p298_p3)   ;;  %v1021_v30 = vld [vmem:[%s1266_s3 + $0x8] sm:$0xff] (!%p298_p3)   ;;  %v1022_v31 = vld [vmem:[%s1266_s3 + $0x10] sm:$0xff] (!%p298_p3)   ;;  %v750_v53 = vstv (!%p298_p3), %s932_s11  ;;  %p358_p6 = scmp.lt.s32.totalorder (!%p298_p3), %s1048_s27, 1 }
   0xc   : > { %540 = vmatpush1.bf16.msra.mxu0 (!%p298_p3), %v1004_v2  ;;  %947 = vmatpush3.bf16.msra.mxu1 (!%p298_p3), %v1020_v28  ;;  %v1023_v32 = vld [vmem:[%s1266_s3 + $0x18] sm:$0xff] (!%p298_p3)   ;;  %v903_v33 = vld [vmem:[%s1265_s2] ss:$0 sm:$0xff] (!%p298_p3)  ;;  %v1025_v42 = vld [vmem:[%s1268_s5 + $0x8] sm:$0xff] (!%p298_p3)   ;;  %v751_v54 = vadd.s32 (!%p298_p3), %v750_v53, %v1150_v7  ;;  %v766_v7 = vand.u32 (!%p298_p3), 127, %v386_v5 }
   0xd   : > { %541 = vmatprep.subr.bf16.mxu0 (!%p298_p3), %v1058_v1  ;;  %948 = vmatprep.subr.bf16.mxu1 (!%p298_p3), %v1060_v29  ;;  %v1024_v41 = vld [vmem:[%s1268_s5] sm:$0xff] (!%p298_p3)   ;;  %v1026_v43 = vld [vmem:[%s1268_s5 + $0x10] sm:$0xff] (!%p298_p3)   ;;  %v1027_v44 = vld [vmem:[%s1268_s5 + $0x18] sm:$0xff] (!%p298_p3)  }
   0xe   : > { %s341_s15 = scalar_select %p340_p4, %s1048_s27, 0  ;;  %v920_v45 = vld [vmem:[%s1267_s4] ss:$0 sm:$0xff]  ;;  %vm752_vm5 = vcmp.lt.s32.totalorder %v751_v54, 2 }
   0xf   : > { %v926_v55 = vld [vmem:[%s1269_s6] ss:$0 sm:$0xff]  ;;  %s1279_s27 = smov (!%p358_p6, %s1048_s27), 1 }
  0x10   : > { %542 = vmatpush1.bf16.msra.mxu0 %v1005_v3  ;;  %s900_s18 = sshll.u32 %s341_s15, 2  ;;  %949 = vmatpush3.bf16.msra.mxu1 %v1021_v30  ;;  %s360_s17 = scalar_lea.vmem %s1270_s7, %s1279_s27 }
  0x11   : > { %543 = vmatprep.subr.bf16.mxu0 %v1058_v1  ;;  %p346_p5 = scmp.lt.s32.totalorder %s900_s18, 0  ;;  %950 = vmatprep.subr.bf16.mxu1 %v1060_v29 }
  0x13   : > { %s1277_s18 = smov (!%p346_p5, %s900_s18), 0 }
  0x14   : > { %544 = vmatpush1.bf16.msra.mxu0 %v1006_v4  ;;  %s935_s21 = sshll.u32 %s1277_s18, 2  ;;  %951 = vmatpush3.bf16.msra.mxu1 %v1022_v31 }
  0x15   : > { %545 = vmatprep.subr.bf16.mxu0 %v1058_v1  ;;  %s350_s26 = scalar_lea.vmem %s1263_s0, %s935_s21  ;;  %952 = vmatprep.subr.bf16.mxu1 %v1060_v29  ;;  %s363_s21 = scalar_lea.vmem %s1271_s8, %s1279_s27 }
  0x16   : > { %v1032_v9 = vld.sshfl [vmem:[%s350_s26] sm:$0xff pattern:$0x76325410]  ;;  %v1033_v10 = vld.sshfl [vmem:[%s350_s26 + $0x8] sm:$0xff pattern:$0x76325410] }
  0x17   : > { %v398_v12 = vcombine.high %v1032_v9, %v1033_v10  ;;  %v397_v25 = vcombine.low %v1032_v9, %v1033_v10 }
  0x18   : > { %546 = vmatpush1.bf16.msra.mxu0 %v1007_v6  ;;  %953 = vmatpush3.bf16.msra.mxu1 %v1023_v32  ;;  %v767_v6 = vmul.u32 4, %v751_v54 }
  0x19   : > { %547 = vmatprep.subr.bf16.mxu0 %v1058_v1  ;;  %v402_v13 = vpack.c.bf16 %v398_v12, %v398_v12  ;;  %v401_v27 = vpack.c.bf16 %v397_v25, %v397_v25  ;;  %958 = vmatprep.subr.bf16.mxu1 %v1060_v29 }
  0x1b   : > { %919 = vmatprep.mubr.msk.bf16.mxu0 %vm526_vm0, %v402_v13 }
  0x1c   : > { %548 = vmatpush1.bf16.msra.mxu0 %v1008_v8  ;;  %v768_v8 = vadd.s32 %v767_v6, %v766_v7 }
  0x1d   : > { %549 = vmatprep.subr.bf16.mxu0 %v1058_v1 }
  0x20   : > { %550 = vmatpush1.bf16.msra.mxu0 %v1009_v11 }
  0x21   : > { %551 = vmatprep.subr.bf16.mxu0 %v1058_v1 }
  0x24   : > { %552 = vmatpush1.bf16.msra.mxu0 %v1010_v14 }
  0x25   : > { %553 = vmatprep.subr.bf16.mxu0 %v1058_v1 }
  0x28   : > { %554 = vmatpush1.bf16.msra.mxu0 %v1011_v15 }
  0x29   : > { %555 = vmatprep.subr.bf16.mxu0 %v1058_v1 }
  0x2c   : > { %556 = vmatpush1.bf16.msra.mxu0 %v1012_v16 }
  0x2d   : > { %557 = vmatprep.subr.bf16.mxu0 %v1058_v1 }
  0x30   : > { %558 = vmatpush1.bf16.msra.mxu0 %v1013_v17 }
  0x31   : > { %559 = vmatprep.subr.bf16.mxu0 %v1058_v1 }
  0x34   : > { %560 = vmatpush1.bf16.msra.mxu0 %v1014_v18 }
  0x35   : > { %561 = vmatprep.subr.bf16.mxu0 %v1058_v1 }
  0x38   : > { %562 = vmatpush1.bf16.msra.mxu0 %v1015_v19 }
  0x39   : > { %563 = vmatprep.subr.bf16.mxu0 %v1058_v1 }
  0x3c   : > { %564 = vmatpush1.bf16.msra.mxu0 %v1016_v22 }
  0x3d   : > { %565 = vmatprep.subr.bf16.mxu0 %v1058_v1 }
  0x40   : > { %566 = vmatpush1.bf16.msra.mxu0 %v535_v26 }
  0x43   : > { %570 = vmatmul.mubr.bf16.vlgmr.msra.gmra.mrb[0].mxu0 %v401_v27 }
 0x116   : > { %v571_v34 = vpop.f32.mrb[0].mxu0 }
 0x117   : > { %v572_v35 = vadd.f32 %v903_v33, %v571_v34  ;;  %v573_v36 = vpop.f32.mrb[1].mxu0 }
 0x118   : > { %v574_v37 = vpop.f32.mrb[2].mxu0 }
 0x119   : > { %1028 = vtanh.f32 %v572_v35  ;;  %v575_v38 = vpop.f32.mrb[3].mxu0 }
 0x123   : > { %v1029_v39 = vpop.eup %1028 }
 0x124   : > { %v578_v40 = vpack.c.bf16 %v1029_v39, %v1029_v39 }
 0x126   : > { %955 = vmatmul.mubr.msk.bf16.vlgmr.msra.gmra.mrb[0].mxu1 %vm618_vm4, %v578_v40 }
 0x127   : > { %966 = vmatprep.mubr.msk.bf16.mxu1 %vm1061_vm3, %v1060_v29  ;;  %959 = vmatpush3.bf16.msra.mxu1 %v1024_v41 }
 0x128   : > { %960 = vmatprep.subr.bf16.mxu1 %v1060_v29 }
 0x12b   : > { %961 = vmatpush3.bf16.msra.mxu1 %v1025_v42 }
 0x12c   : > { %962 = vmatprep.subr.bf16.mxu1 %v1060_v29 }
 0x12f   : > { %963 = vmatpush3.bf16.msra.mxu1 %v1026_v43 }
 0x130   : > { %964 = vmatprep.subr.bf16.mxu1 %v1060_v29 }
 0x133   : > { %965 = vmatpush3.bf16.msra.mxu1 %v1027_v44 }
 0x1f9   : > { %v656_v46 = vpop.f32.mrb[0].mxu1 }
 0x1fa   : > { %v657_v47 = vadd.f32 %v920_v45, %v656_v46  ;;  %v956_v48 = vpop.f32.mrb[1].mxu1 }
 0x1fb   : > { %v659_v49 = vpop.f32.mrb[2].mxu1 }
 0x1fc   : > { %1030 = vtanh.f32 %v657_v47  ;;  %v957_v50 = vpop.f32.mrb[3].mxu1 }
 0x206   : > { %v1031_v51 = vpop.eup %1030 }
 0x207   : > { %v663_v52 = vpack.c.bf16 %v1031_v51, %v1031_v51 }
 0x209   : > { %967 = vmatmul.mubr.msk.bf16.vlgmr.msra.gmra.mrb[4].mxu1 %vm618_vm4, %v663_v52 }
 0x2dc   : > { %v740_v56 = vpop.f32.mrb[4].mxu1 }
 0x2dd   : > { %v741_v57 = vadd.f32 %v926_v55, %v740_v56  ;;  %v968_v58 = vpop.f32.mrb[5].mxu1 }
 0x2de   : > { %v743_v59 = vpop.f32.mrb[6].mxu1 }
 0x2df   : > { %v969_v60 = vpop.f32.mrb[7].mxu1  ;;  %v755_v61 = vsel %vm752_vm5, %v741_v57, -inf }
 0x2e0   : > { %756 = vmax.xlane.f32.xlu0 %v755_v61 }
 0x36d   : > { %v757_v62 = vpop.xlane.xlu0 %756 }
 0x36e   : > { %v758_v63 = vrot.slane %v757_v62, 4 }
 0x370   : > { %v759_v0 = vmax.f32 %v757_v62, %v758_v63 }
 0x372   : > { %v760_v1 = vrot.slane %v759_v0, 2 }
 0x374   : > { %v761_v2 = vmax.f32 %v759_v0, %v760_v1 }
 0x376   : > { %v762_v3 = vrot.slane %v761_v2, 1 }
 0x378   : > { %v763_v4 = vmax.f32 %v761_v2, %v762_v3 }
 0x37a   : > { %970 = vpush %v763_v4 }
 0x3ab   : > { %s1237_s14 = spop %970 }
 0x3ac   : > { %v769_v9 = vstv %s1237_s14  ;;  %p797_p7 = scmp.gt.f32.partialorder %s1237_s14, -inf }
 0x3ad   : > { %vm770_vm6 = vcmp.eq.f32.partialorder %v755_v61, %v769_v9 }
 0x3ae   : > { %v771_v10 = vsel %vm770_vm6, %v768_v8, 2147483647  ;;  %s803_s18 = scalar_select %p797_p7, %s1237_s14, -inf }
 0x3af   : > { %v773_v5 = vshra.s32 %v771_v10, 16  ;;  %v772_v13 = vand.u32 65535, %v771_v10 }
 0x3b0   : > { %v810_v11 = vstv %s803_s18 }
 0x3b1   : > { %v775_v12 = vcvt.s32.f32 %v773_v5  ;;  %811 = vst [vmem:[%s360_s17] sm:$0x1] %v810_v11  ;;  %v774_v15 = vcvt.s32.f32 %v772_v13 }
 0x3b3   : > { %776 = vmin.xlane.f32.xlu0 %v775_v12 }
 0x440   : > { %v777_v14 = vpop.xlane.xlu0 %776 }
 0x441   : > { %vm778_vm7 = vcmp.eq.f32.partialorder %v775_v12, %v777_v14  ;;  %v783_v17 = vcvt.f32.s32 %v777_v14 }
 0x442   : > { %v779_v16 = vsel %vm778_vm7, %v774_v15, inf }
 0x443   : > { %780 = vmin.xlane.f32.xlu1 %v779_v16  ;;  %v784_v19 = vshll.u32 %v783_v17, 16 }
 0x4d0   : > { %v781_v18 = vpop.xlane.xlu1 %780 }
 0x4d1   : > { %v782_v20 = vcvt.f32.s32 %v781_v18 }
 0x4d3   : > { %v785_v21 = vadd.s32 %v784_v19, %v782_v20 }
 0x4d5   : > { %v786_v22 = vrot.slane %v785_v21, 4 }
 0x4d7   : > { %vm787_vm8 = vcmp.lt.s32.totalorder %v785_v21, %v786_v22 }
 0x4d8   : > { %v788_v23 = vsel %vm787_vm8, %v785_v21, %v786_v22 }
 0x4d9   : > { %v789_v24 = vrot.slane %v788_v23, 2 }
 0x4db   : > { %vm790_vm9 = vcmp.lt.s32.totalorder %v788_v23, %v789_v24 }
 0x4dc   : > { %v791_v25 = vsel %vm790_vm9, %v788_v23, %v789_v24 }
 0x4dd   : > { %v792_v26 = vrot.slane %v791_v25, 1 }
 0x4df   : > { %vm793_vm10 = vcmp.lt.s32.totalorder %v791_v25, %v792_v26 }
 0x4e0   : > { %v794_v27 = vsel %vm793_vm10, %v791_v25, %v792_v26 }
 0x4e1   : > { %972 = vpush %v794_v27 }
 0x512   : > { %s973_s22 = spop %972 }
 0x513   : > { %s1281_s22 = smov (!%p797_p7, %s973_s22), 0 }
 0x514   : > { %v813_v28 = vstv %s1281_s22 }
 0x515   : > { %814 = vst [vmem:[%s363_s21] sm:$0x1] %v813_v28 }
 0x516 PF: > { %s19_s29 = sadd.s32 1, %s1056_s29   ;;  %s1272_s27 = smov %s1052_s28 }
 0x517   : > { %p16_p8 = scmp.ge.s32.totalorder %s19_s29, 4   ;;  %s1273_s28 = smov %s1275_s30 }
 0x519   :  { %18 = sbr.rel (!%p16_p8) target bundleno = 2 (0x2), region = 102 }

</bundles_post_ra>
